<compile_context>
chip_gen: v6e
topology: v6e:2x2x1
jax: 0.10.0
libtpu: 0.0.40
codegen_flags: <defaults>
</compile_context>

<pallas_src>
import functools

import jax
import jax.numpy as jnp
from jax.experimental import pallas as pl
from jax.experimental.pallas import tpu as pltpu

LANE = 128
SUBLANE = 8


def _round_up(n, m):
    return (n + m - 1) // m * m


def _mlp_kernel(x_ref, w1_ref, b1_ref, w2_ref, b2_ref, o_ref, *, approx_sigmoid):
    # ---- layer 1 on the MXU: (TB, Kp) @ (Kp, Hp), f32 accumulation ----
    h = jnp.dot(x_ref[...], w1_ref[...], preferred_element_type=jnp.float32)
    h = jnp.maximum(h + b1_ref[...], 0.0)                    # bias + ReLU (VPU, f32)

    # ---- layer 2 (Hp -> 1): VPU multiply + XLU lane reduction ----
    # W2 is a (1, Hp) row; an N=1 MXU matmul would waste the systolic array.
    prod = h * w2_ref[...]                                   # (TB, Hp) f32
    rows, lanes = o_ref.shape                                # (TB//128, 128)
    # Split the batch tile into rows of 128 (tile-aligned split of the leading dim) so
    # the reduction result lands lane-dense -> unmasked full-width stores.
    s = jnp.sum(prod.reshape(rows, lanes, prod.shape[-1]), axis=-1)   # (rows, 128)

    # ---- sigmoid: EUP exp (+ approx reciprocal, also EUP -> nearly free) ----
    logits = s + b2_ref[0, 0]                                # b2 scalar from SMEM
    y = pl.reciprocal(1.0 + jnp.exp(-logits), approx=approx_sigmoid)

    o_ref[...] = y.astype(o_ref.dtype)                       # lane-dense (rows, 128)


def neural_net1_forward(x, w1, b1, w2, b2, *, block_b=4096,
                        compute_dtype=jnp.bfloat16, approx_sigmoid=True):
    """Forward pass of NeuralNet1: sigmoid(relu(x @ w1 + b1) @ w2 + b2).

    x : (B, input_size)
    w1: (input_size, hidden)   (PyTorch linear1.weight.T)
    b1: (hidden,) or (1, hidden)
    w2: (hidden, 1)            (PyTorch linear2.weight.T)
    b2: scalar / (1, 1)

    compute_dtype: dtype of x/W1 fed to the MXU (default bf16 -- halves x HBM reads
    and doubles MXU rate on every generation; accumulation/epilogue stay f32).
    Pass jnp.float32 for exact-f32 pre-activations.
    approx_sigmoid: use the EUP approximate reciprocal in the sigmoid (~1e-3 error);
    pass False for an exact divide.
    """
    B, K = x.shape
    Kin, H = w1.shape
    assert K == Kin, "x / w1 shape mismatch"

    # Feature dims padded to lane width (128). Do NOT pad to 256 for the 2x256^2 MXUs:
    # the kernel is HBM-bound and that would double x/W1 bytes for zero benefit.
    Kp = _round_up(K, LANE)
    Hp = _round_up(H, LANE)

    # ---- batch tiling --------------------------------------------------------
    # Packed output block is (TB//128, 128) -> TB must be a multiple of 128; multi-tile
    # grids additionally need TB % 1024 == 0 so TB//128 is a multiple of 8 ((8,128)
    # rule). Keep >= 2 grid steps whenever the batch allows (v7x megacore sharding).
    if B >= 2 * 1024:
        TB = min(_round_up(block_b, 1024), _round_up((B + 1) // 2, 1024))
        Bp = _round_up(B, TB)
        grid_b = Bp // TB
    else:
        TB = _round_up(B, LANE)          # single tile: block == full array
        Bp = TB
        grid_b = 1

    # ---- operands ------------------------------------------------------------
    xd = x.astype(compute_dtype)
    if (B, K) != (Bp, Kp):
        # Zero-pad only when the shape actually needs it (the extra pass over x roughly
        # doubles HBM traffic for aligned inputs, so skip it then). Padding K columns of
        # W1/W2 are zero -> math unchanged; padded batch rows are sliced off below.
        xp = jnp.zeros((Bp, Kp), compute_dtype).at[:B, :K].set(xd)
    else:
        xp = xd
    w1p = jnp.zeros((Kp, Hp), compute_dtype).at[:K, :H].set(w1.astype(compute_dtype))
    b1p = jnp.zeros((1, Hp), jnp.float32).at[:, :H].set(
        jnp.reshape(b1, (1, H)).astype(jnp.float32))
    w2p = jnp.zeros((1, Hp), jnp.float32).at[:, :H].set(
        jnp.reshape(w2, (1, H)).astype(jnp.float32))          # W2 as a row (VPU path)
    b2p = jnp.reshape(jnp.asarray(b2, jnp.float32), (1, 1))   # scalar -> SMEM

    # x pipeline depth: a third buffer on multi-tile grids hides DMA jitter (mainly
    # helps v5e's slower HBM); costs one extra TB*Kp tile of VMEM.
    n_x_buf = 3 if grid_b >= 3 else 2
    if n_x_buf == 3:
        x_spec = pl.BlockSpec((TB, Kp), lambda i: (i, 0),
                              pipeline_mode=pl.Buffered(3))
    else:
        x_spec = pl.BlockSpec((TB, Kp), lambda i: (i, 0))

    # VMEM budget: buffered x tiles + packed output tiles + resident weights +
    # intermediates, with headroom; capped at 48 MiB (never claim all of v7x's VMEM).
    isz = jnp.dtype(compute_dtype).itemsize
    est = (n_x_buf * TB * Kp * isz          # x tiles
           + 2 * (TB // LANE) * LANE * 4    # packed output tiles (double-buffered)
           + 2 * Kp * Hp * isz              # W1 (constant index_map, still 2x)
           + 4 * SUBLANE * Hp * 4           # b1 / w2 rows (sublane-padded)
           + 2 * TB * Hp * 4)               # hidden activation + product
    vmem_limit = min(max(2 * est + (4 << 20), 16 << 20), 48 << 20)

    out = pl.pallas_call(
        functools.partial(_mlp_kernel, approx_sigmoid=approx_sigmoid),
        out_shape=jax.ShapeDtypeStruct((Bp // LANE, LANE), jnp.float32),
        grid=(grid_b,),
        in_specs=[
            x_spec,                                            # x: tiled over batch
            pl.BlockSpec((Kp, Hp), lambda i: (0, 0)),          # W1: resident
            pl.BlockSpec((1, Hp), lambda i: (0, 0)),           # b1: resident
            pl.BlockSpec((1, Hp), lambda i: (0, 0)),           # W2 row: resident
            pl.BlockSpec(memory_space=pltpu.MemorySpace.SMEM), # b2: SMEM scalar
        ],
        out_specs=pl.BlockSpec((TB // LANE, LANE), lambda i: (i, 0)),
        compiler_params=pltpu.CompilerParams(
            dimension_semantics=("parallel",),                 # megacore batch shard
            vmem_limit_bytes=vmem_limit,
        ),
    )(xp, w1p, b1p, w2p, b2p)

    # Lane-dense slab (Bp//128, 128) holds batch element b at [b // 128, b % 128];
    # a row-major reshape recovers batch order, then drop padded rows.
    return out.reshape(Bp, 1)[:B]


def init_params(key, input_size, hidden_size):
    """Deterministic init mimicking nn.Linear's U(-1/sqrt(fan_in), 1/sqrt(fan_in))."""
    k1, k2, k3, k4 = jax.random.split(key, 4)
    bound1 = 1.0 / jnp.sqrt(jnp.float32(input_size))
    bound2 = 1.0 / jnp.sqrt(jnp.float32(hidden_size))
    # Stored transposed relative to PyTorch (in, out) so the kernel does x @ W.
    w1 = jax.random.uniform(k1, (input_size, hidden_size), jnp.float32, -bound1, bound1)
    b1 = jax.random.uniform(k2, (1, hidden_size), jnp.float32, -bound1, bound1)
    w2 = jax.random.uniform(k3, (hidden_size, 1), jnp.float32, -bound2, bound2)
    b2 = jax.random.uniform(k4, (1, 1), jnp.float32, -bound2, bound2)
    return w1, b1, w2, b2


if __name__ == "__main__":
    batch = 8
    input_size = 16
    hidden_size = 32

    key = jax.random.PRNGKey(0)
    kx, kp = jax.random.split(key)
    x = jax.random.normal(kx, (batch, input_size), jnp.float32)
    w1, b1, w2, b2 = init_params(kp, input_size, hidden_size)

    # Reference check in plain JAX (f32).
    h_ref = jnp.maximum(x @ w1 + b1, 0.0)
    y_ref = jax.nn.sigmoid(h_ref @ w2 + b2)

    # Default fast path: bf16 x/W1 into the MXU, approx-reciprocal sigmoid.
    y = jax.block_until_ready(neural_net1_forward(x, w1, b1, w2, b2))
    assert y.shape == (batch, 1)
    assert jnp.allclose(y, y_ref, atol=2e-2, rtol=2e-2), (y, y_ref)

    # f32 / exact-sigmoid path: tighter check.
    y32 = jax.block_until_ready(
        neural_net1_forward(x, w1, b1, w2, b2,
                            compute_dtype=jnp.float32, approx_sigmoid=False))
    assert jnp.allclose(y32, y_ref, atol=2e-3, rtol=2e-3), (y32, y_ref)

    print("KERNEL_OK")
</pallas_src>

<mosaic_0001>
module attributes {stable_mosaic.version = 11 : i64} {
  func.func @_mlp_kernel(%arg0: i32, %arg1: memref<128x128xbf16, #tpu.memory_space<vmem>>, %arg2: memref<128x128xbf16, #tpu.memory_space<vmem>>, %arg3: memref<1x128xf32, #tpu.memory_space<vmem>>, %arg4: memref<1x128xf32, #tpu.memory_space<vmem>>, %arg5: memref<1x1xf32, #tpu.memory_space<smem>>, %arg6: memref<1x128xf32, #tpu.memory_space<vmem>>) attributes {dimension_semantics = [#tpu.dimension_semantics<parallel>], iteration_bounds = array<i64: 1>, scalar_prefetch = 0 : i64, scratch_operands = 0 : i64, tpu.core_type = #tpu.core_type<tc>, window_params = [{transform_indices = @transform_0, window_bounds = array<i64: 128, 128>}, {pipeline_mode = #tpu.pipeline_mode<synchronous>, transform_indices = @transform_1, window_bounds = array<i64: 128, 128>}, {pipeline_mode = #tpu.pipeline_mode<synchronous>, transform_indices = @transform_2, window_bounds = array<i64: 1, 128>}, {pipeline_mode = #tpu.pipeline_mode<synchronous>, transform_indices = @transform_3, window_bounds = array<i64: 1, 128>}, {transform_indices = @transform_4, window_bounds = array<i64: 1, 1>}, {transform_indices = @transform_5, window_bounds = array<i64: 1, 128>}]} {
    %c0 = arith.constant 0 : index
    %c0_0 = arith.constant 0 : index
    %0 = vector.load %arg1[%c0, %c0_0] : memref<128x128xbf16, #tpu.memory_space<vmem>>, vector<128x128xbf16>
    %c0_1 = arith.constant 0 : index
    %c0_2 = arith.constant 0 : index
    %1 = vector.load %arg2[%c0_1, %c0_2] : memref<128x128xbf16, #tpu.memory_space<vmem>>, vector<128x128xbf16>
    %cst = arith.constant dense<0.000000e+00> : vector<128x128xf32>
    %2 = tpu.matmul %0, %1, %cst {dimension_numbers = #tpu.dot_dimension_numbers<[1], [0], [0], [1], [0, 0, 1, 1], [], []>} : vector<128x128xbf16>, vector<128x128xbf16>, vector<128x128xf32> -> vector<128x128xf32>
    %c0_3 = arith.constant 0 : index
    %c0_4 = arith.constant 0 : index
    %3 = vector.load %arg3[%c0_3, %c0_4] : memref<1x128xf32, #tpu.memory_space<vmem>>, vector<1x128xf32>
    %4 = vector.broadcast %3 : vector<1x128xf32> to vector<128x128xf32>
    %5 = arith.addf %2, %4 : vector<128x128xf32>
    %cst_5 = arith.constant 0.000000e+00 : f32
    %6 = vector.broadcast %cst_5 : f32 to vector<128x128xf32>
    %7 = arith.maximumf %5, %6 : vector<128x128xf32>
    %c0_6 = arith.constant 0 : index
    %c0_7 = arith.constant 0 : index
    %8 = vector.load %arg4[%c0_6, %c0_7] : memref<1x128xf32, #tpu.memory_space<vmem>>, vector<1x128xf32>
    %9 = vector.broadcast %8 : vector<1x128xf32> to vector<128x128xf32>
    %10 = arith.mulf %7, %9 : vector<128x128xf32>
    %11 = vector.shape_cast %10 : vector<128x128xf32> to vector<1x128x128xf32>
    %cst_8 = arith.constant dense<0.000000e+00> : vector<1x128xf32>
    %12 = vector.multi_reduction <add>, %11, %cst_8 [2] : vector<1x128x128xf32> to vector<1x128xf32>
    %c0_9 = arith.constant 0 : index
    %c0_10 = arith.constant 0 : index
    %13 = memref.load %arg5[%c0_9, %c0_10] : memref<1x1xf32, #tpu.memory_space<smem>>
    %14 = vector.broadcast %13 : f32 to vector<1x128xf32>
    %15 = arith.addf %12, %14 : vector<1x128xf32>
    %cst_11 = arith.constant 0.000000e+00 : f32
    %16 = vector.broadcast %cst_11 : f32 to vector<1x128xf32>
    %17 = arith.subf %16, %15 : vector<1x128xf32>
    %18 = math.exp %17 : vector<1x128xf32>
    %cst_12 = arith.constant 1.000000e+00 : f32
    %19 = vector.broadcast %cst_12 : f32 to vector<1x128xf32>
    %20 = arith.addf %19, %18 : vector<1x128xf32>
    %21 = tpu.reciprocal %20 {approx = true} : vector<1x128xf32> -> vector<1x128xf32>
    %c0_13 = arith.constant 0 : index
    %c0_14 = arith.constant 0 : index
    %22 = vector.load %arg6[%c0_13, %c0_14] : memref<1x128xf32, #tpu.memory_space<vmem>>, vector<1x128xf32>
    tpu.vector_store %arg6[%c0_13, %c0_14], %21 {strides = array<i32>} : memref<1x128xf32, #tpu.memory_space<vmem>>, vector<1x128xf32>,
    return
  }
  func.func @transform_0(%arg0: i32) -> (i32, i32) {
    %c0_i32 = arith.constant 0 : i32
    %c0_i32_0 = arith.constant 0 : i32
    return %arg0, %c0_i32 : i32, i32
  }
  func.func @transform_1(%arg0: i32) -> (i32, i32) {
    %c0_i32 = arith.constant 0 : i32
    %c0_i32_0 = arith.constant 0 : i32
    %c0_i32_1 = arith.constant 0 : i32
    return %c0_i32, %c0_i32_0 : i32, i32
  }
  func.func @transform_2(%arg0: i32) -> (i32, i32) {
    %c0_i32 = arith.constant 0 : i32
    %c0_i32_0 = arith.constant 0 : i32
    %c0_i32_1 = arith.constant 0 : i32
    return %c0_i32, %c0_i32_0 : i32, i32
  }
  func.func @transform_3(%arg0: i32) -> (i32, i32) {
    %c0_i32 = arith.constant 0 : i32
    %c0_i32_0 = arith.constant 0 : i32
    %c0_i32_1 = arith.constant 0 : i32
    return %c0_i32, %c0_i32_0 : i32, i32
  }
  func.func @transform_4(%arg0: i32) -> (i32, i32) {
    %c0_i32 = arith.constant 0 : i32
    %c0_i32_0 = arith.constant 0 : i32
    %c0_i32_1 = arith.constant 0 : i32
    return %c0_i32, %c0_i32_0 : i32, i32
  }
  func.func @transform_5(%arg0: i32) -> (i32, i32) {
    %c0_i32 = arith.constant 0 : i32
    %c0_i32_0 = arith.constant 0 : i32
    return %arg0, %c0_i32 : i32, i32
  }
}

</mosaic_0001>

<bundles_post_ra>
// kernel: tpu_custom_call.1
= control target key start
LH: loop header
LB: loop body
LE: loop exit
PB: predicated region body
PF: predicated region fallthrough
CT: control target
= control target key end

     0   :  { %11 = vsyncpa [#allocation4], 0  ;;  %s973_s0 = inlined_call_operand.hbm [shape: bf16[128,128], index: 0, kind: input, shape index: {}]   ;;  %s974_s1 = inlined_call_operand.hbm [shape: bf16[128,128], index: 1, kind: input, shape index: {}]   ;;  %s975_s2 = inlined_call_operand.vmem [shape: f32[1,128], index: 2, kind: input, shape index: {}]   ;;  %s976_s3 = inlined_call_operand.vmem [shape: f32[1,128], index: 3, kind: input, shape index: {}]   ;;  %s977_s4 = inlined_call_operand.<no memory space> [shape: f32[1,1], index: 4, kind: input, shape index: {}]   ;;  %s978_s5 = inlined_call_operand.hbm [shape: f32[1,128], index: 5, kind: output, shape index: {}]  }
   0x1   :  { %12 = vsyncpa [#allocation7], 0 }
   0x2   :  { %13 = vsyncpa [#allocation5], 0  ;;  %s830_s18 = smov [#allocation3]  }
   0x3   :  { %s19_s19 = sshll.u32 %s830_s18, 4  ;;  %s20_s19 = int_to_ptr.vmem [resolvable:$true] %s19_s19 }
   0x4   :  { %s772_s20 = scalar_lea.vmem %s20_s19, 1024  ;;  %p777_p1 = scmp.lt.s32.totalorder %s20_s19, %s20_s19 }
   0x5   :  { %p773_p0 = scmp.ne.s32.totalorder %s20_s19, %s772_s20  ;;  %p778_p2 = scmp.lt.s32.totalorder %s772_s20, %s772_s20 }
   0x7   :  { %p779_p3 = por %p778_p2, %p777_p1 }
   0x9   :  { %p780_p4 = pnand %p779_p3, %p773_p0 }
   0xb   :  { %783 = shalt.err (!%p780_p4)
}
   0xc   :  { %s831_s21 = smov 64   ;;  %s832_s22 = smov 4  }
   0xd   :  { %25 = dma.hbm_to_vmem [thread:$0]  %s973_s0, 1024, %s20_s19, [#allocation4], %s831_s21, %s831_s21, %s832_s22  }
   0xe   :  { %s833_s25 = smov [#allocation6]  }
   0xf   :  { %s31_s26 = sshll.u32 %s833_s25, 4  ;;  %s32_s26 = int_to_ptr.vmem [resolvable:$true] %s31_s26 }
  0x10   :  { %s792_s27 = scalar_lea.vmem %s32_s26, 1024  ;;  %p797_p6 = scmp.lt.s32.totalorder %s32_s26, %s32_s26 }
  0x11   :  { %p793_p5 = scmp.ne.s32.totalorder %s32_s26, %s792_s27  ;;  %p798_p7 = scmp.lt.s32.totalorder %s792_s27, %s792_s27 }
  0x13   :  { %p799_p8 = por %p798_p7, %p797_p6 }
  0x15   :  { %p800_p9 = pnand %p799_p8, %p793_p5 }
  0x17   :  { %803 = shalt.err (!%p800_p9)
}
  0x18   :  { %37 = dma.hbm_to_vmem [thread:$0]  %s974_s1, 1024, %s32_s26, [#allocation7], %s831_s21, %s831_s21, %s832_s22  }
  0x19   :  { %824 = dma.done.wait [#allocation4], 1024  }
  0x1a   :  { %825 = vsyncadd [#allocation4], 4294966272 }
  0x1b   :  { %826 = dma.done.wait [#allocation7], 1024  }
  0x1c   :  { %827 = vsyncadd [#allocation7], 4294966272  ;;  %v684_v0 = vld [vmem:[#allocation6 + $0x38] sm:$0xff]   ;;  %v685_v1 = vld [vmem:[#allocation6 + $0x30] sm:$0xff]   ;;  %vm479_vm0 = vcmask 130112   ;;  %vm486_vm1 = vcmask 195712  }
  0x1d   :  { %631 = vmatprep.subr.bf16.mxu0 %v684_v0  ;;  %663 = vmatprep.subr.bf16.mxu1 %v684_v0  ;;  %v686_v2 = vld [vmem:[#allocation6 + $0x28] sm:$0xff]   ;;  %v687_v3 = vld [vmem:[#allocation6 + $0x20] sm:$0xff]   ;;  %v688_v6 = vld [vmem:[#allocation6 + $0x18] sm:$0xff]   ;;  %vm493_vm2 = vcmask 261312   ;;  %vm500_vm3 = vcmask 326912   ;;  %vm507_vm4 = vcmask 392512  }
  0x1e   :  { %632 = vmatpush3.bf16.msra.mxu0 %v684_v0  ;;  %671 = vmatpush3.bf16.msra.mxu1 %v684_v0  ;;  %v692_v4 = vld [vmem:[#allocation3] sm:$0xff]   ;;  %v689_v7 = vld [vmem:[#allocation6 + $0x10] sm:$0xff]   ;;  %v690_v8 = vld [vmem:[#allocation6 + $0x8] sm:$0xff]   ;;  %vm514_vm5 = vcmask 458112   ;;  %vm521_vm6 = vcmask 523712   ;;  %vm528_vm7 = vcmask 589312  }
  0x1f   :  { %633 = vmatprep.subr.bf16.mxu0 %v685_v1  ;;  %664 = vmatprep.subr.bf16.mxu1 %v685_v1  ;;  %v693_v5 = vld [vmem:[#allocation3 + $0x20] sm:$0xff]   ;;  %v694_v10 = vld [vmem:[#allocation3 + $0x8] sm:$0xff]   ;;  %v696_v12 = vld [vmem:[#allocation3 + $0x10] sm:$0xff]   ;;  %vm535_vm8 = vcmask 654912   ;;  %vm542_vm9 = vcmask 720512   ;;  %vm549_vm10 = vcmask 786112  }
  0x20   :  { %647 = vmatprep.mubr.bf16.mxu0 %v692_v4  ;;  %655 = vmatprep.mubr.bf16.mxu1 %v693_v5  ;;  %v691_v9 = vld [vmem:[#allocation6] sm:$0xff]   ;;  %v695_v11 = vld [vmem:[#allocation3 + $0x28] sm:$0xff]   ;;  %v698_v13 = vld [vmem:[#allocation3 + $0x30] sm:$0xff]   ;;  %vm556_vm11 = vcmask 851712   ;;  %vm563_vm12 = vcmask 917312   ;;  %vm570_vm13 = vcmask 982912  }
  0x21   :  { %v697_v14 = vld [vmem:[#allocation3 + $0x18] sm:$0xff]   ;;  %v874_v16 = vld [vmem:[%s975_s2] ss:$0 sm:$0xff]  ;;  %vm577_vm14 = vcmask 1048512  }
  0x22   :  { %634 = vmatpush3.bf16.msra.mxu0 %v685_v1  ;;  %672 = vmatpush3.bf16.msra.mxu1 %v685_v1  ;;  %v699_v15 = vld [vmem:[#allocation3 + $0x38] sm:$0xff]   ;;  %v881_v24 = vld [vmem:[%s976_s3] ss:$0 sm:$0xff] }
  0x23   :  { %635 = vmatprep.subr.bf16.mxu0 %v686_v2  ;;  %665 = vmatprep.subr.bf16.mxu1 %v686_v2 }
  0x26   :  { %636 = vmatpush3.bf16.msra.mxu0 %v686_v2  ;;  %673 = vmatpush3.bf16.msra.mxu1 %v686_v2 }
  0x27   :  { %637 = vmatprep.subr.bf16.mxu0 %v687_v3  ;;  %666 = vmatprep.subr.bf16.mxu1 %v687_v3 }
  0x2a   :  { %638 = vmatpush3.bf16.msra.mxu0 %v687_v3  ;;  %674 = vmatpush3.bf16.msra.mxu1 %v687_v3 }
  0x2b   :  { %639 = vmatprep.subr.bf16.mxu0 %v688_v6  ;;  %667 = vmatprep.subr.bf16.mxu1 %v688_v6 }
  0x2e   :  { %640 = vmatpush3.bf16.msra.mxu0 %v688_v6  ;;  %675 = vmatpush3.bf16.msra.mxu1 %v688_v6 }
  0x2f   :  { %641 = vmatprep.subr.bf16.mxu0 %v689_v7  ;;  %668 = vmatprep.subr.bf16.mxu1 %v689_v7 }
  0x32   :  { %642 = vmatpush3.bf16.msra.mxu0 %v689_v7  ;;  %676 = vmatpush3.bf16.msra.mxu1 %v689_v7 }
  0x33   :  { %643 = vmatprep.subr.bf16.mxu0 %v690_v8  ;;  %669 = vmatprep.subr.bf16.mxu1 %v690_v8 }
  0x36   :  { %644 = vmatpush3.bf16.msra.mxu0 %v690_v8  ;;  %677 = vmatpush3.bf16.msra.mxu1 %v690_v8 }
  0x37   :  { %645 = vmatprep.subr.bf16.mxu0 %v691_v9  ;;  %670 = vmatprep.subr.bf16.mxu1 %v691_v9 }
  0x3a   :  { %646 = vmatpush3.bf16.msra.mxu0 %v691_v9  ;;  %678 = vmatpush3.bf16.msra.mxu1 %v691_v9 }
  0x3d   :  { %648 = vmatmul.mubr.bf16.vlgmr.msra.gmra.mxu0 %v694_v10  ;;  %656 = vmatmul.mubr.bf16.vlgmr.msra.gmra.mxu1 %v695_v11 }
  0x3e   :  { %651 = vmatprep.mubr.bf16.mxu0 %v696_v12  ;;  %659 = vmatprep.mubr.bf16.mxu1 %v698_v13 }
  0x45   :  { %652 = vmatmul.mubr.bf16.gmra.mxu0 %v697_v14  ;;  %660 = vmatmul.mubr.bf16.gmra.mxu1 %v699_v15 }
  0xfd   :  { %v649_v17 = vpop.f32.mrf.mxu0  ;;  %v657_v18 = vpop.f32.mrf.mxu1 }
  0xfe   :  { %v229_v19 = vadd.f32 %v649_v17, %v874_v16  ;;  %v261_v61 = vadd.f32 %v657_v18, %v874_v16 }
  0xff   :  { %v220_v20 = vpop.f32.mrf.mxu0  ;;  %v252_v21 = vpop.f32.mrf.mxu1 }
 0x100   :  { %v285_v22 = vmax.f32 %v229_v19, 0.0  ;;  %v221_v23 = vadd.f32 %v874_v16, %v220_v20  ;;  %v253_v25 = vadd.f32 %v874_v16, %v252_v21  ;;  %v293_v3 = vmax.f32 %v261_v61, 0.0 }
 0x101   :  { %v650_v26 = vpop.f32.mrf.mxu0  ;;  %v658_v27 = vpop.f32.mrf.mxu1 }
 0x102   :  { %v283_v28 = vmax.f32 %v221_v23, 0.0  ;;  %v232_v29 = vadd.f32 %v650_v26, %v874_v16  ;;  %v308_v32 = vmul.f32 %v881_v24, %v285_v22  ;;  %v291_v35 = vmax.f32 %v253_v25, 0.0 }
 0x103   :  { %v223_v30 = vpop.f32.mrf.mxu0  ;;  %v255_v31 = vpop.f32.mrf.mxu1  ;;  %v264_v58 = vadd.f32 %v658_v27, %v874_v16  ;;  %v316_v11 = vmul.f32 %v881_v24, %v293_v3 }
 0x104   :  { %v286_v33 = vmax.f32 %v232_v29, 0.0  ;;  %v256_v34 = vadd.f32 %v874_v16, %v255_v31  ;;  %v224_v36 = vadd.f32 %v874_v16, %v223_v30  ;;  %326 = vadd.xlane.f32.xlu1 %v308_v32  ;;  %v306_v38 = vmul.f32 %v881_v24, %v283_v28 }
 0x105   :  { %v653_v37 = vpop.f32.mrf.mxu0  ;;  %v661_v39 = vpop.f32.mrf.mxu1  ;;  %v314_v47 = vmul.f32 %v881_v24, %v291_v35  ;;  %v294_v0 = vmax.f32 %v264_v58, 0.0 }
 0x106   :  { %v309_v40 = vmul.f32 %v881_v24, %v286_v33  ;;  %v292_v41 = vmax.f32 %v256_v34, 0.0  ;;  %322 = vadd.xlane.f32.xlu0 %v306_v38  ;;  %v284_v44 = vmax.f32 %v224_v36, 0.0  ;;  %v245_v45 = vadd.f32 %v653_v37, %v874_v16 }
 0x107   :  { %v236_v42 = vpop.f32.mrf.mxu0  ;;  %v268_v43 = vpop.f32.mrf.mxu1  ;;  %v317_v8 = vmul.f32 %v881_v24, %v294_v0  ;;  %v277_v9 = vadd.f32 %v661_v39, %v874_v16 }
 0x108   :  { %328 = vadd.xlane.f32.xlu1 %v309_v40  ;;  %v315_v50 = vmul.f32 %v881_v24, %v292_v41  ;;  %v289_v54 = vmax.f32 %v245_v45, 0.0  ;;  %v237_v55 = vadd.f32 %v874_v16, %v236_v42  ;;  %v307_v56 = vmul.f32 %v881_v24, %v284_v44 }
 0x109   :  { %v654_v46 = vpop.f32.mrf.mxu0  ;;  %v662_v53 = vpop.f32.mrf.mxu1  ;;  %v269_v4 = vadd.f32 %v874_v16, %v268_v43  ;;  %v297_v14 = vmax.f32 %v277_v9, 0.0 }
 0x10a   :  { %v248_v48 = vadd.f32 %v654_v46, %v874_v16  ;;  %338 = vadd.xlane.f32.xlu0 %v314_v47  ;;  %v287_v62 = vmax.f32 %v237_v55, 0.0  ;;  %v312_v63 = vmul.f32 %v881_v24, %v289_v54  ;;  %v280_v6 = vadd.f32 %v662_v53, %v874_v16 }
 0x10b   :  { %v239_v49 = vpop.f32.mrf.mxu0  ;;  %v271_v60 = vpop.f32.mrf.mxu1  ;;  %v295_v10 = vmax.f32 %v269_v4, 0.0  ;;  %v320_v18 = vmul.f32 %v881_v24, %v297_v14 }
 0x10c   :  { %v290_v51 = vmax.f32 %v248_v48, 0.0  ;;  %v240_v52 = vadd.f32 %v874_v16, %v239_v49  ;;  %340 = vadd.xlane.f32.xlu1 %v315_v50  ;;  %v272_v1 = vadd.f32 %v874_v16, %v271_v60  ;;  %v310_v5 = vmul.f32 %v881_v24, %v287_v62 }
 0x10d   :  { %v298_v12 = vmax.f32 %v280_v6, 0.0  ;;  %v318_v15 = vmul.f32 %v881_v24, %v295_v10  ;;  %v916_v16 = vstv %s977_s4  ;;  %s834_s4 = smov [#allocation8]  }
 0x10e   :  { %v313_v57 = vmul.f32 %v881_v24, %v290_v51  ;;  %v288_v59 = vmax.f32 %v240_v52, 0.0  ;;  %324 = vadd.xlane.f32.xlu0 %v307_v56  ;;  %v296_v7 = vmax.f32 %v272_v1, 0.0  ;;  %s587_s7 = sshll.u32 %s834_s4, 4  ;;  %s588_s7 = int_to_ptr.vmem [resolvable:$true] %s587_s7 }
 0x10f   :  { %v321_v17 = vmul.f32 %v881_v24, %v298_v12  ;;  %s804_s8 = scalar_lea.vmem %s588_s7, 16  ;;  %s808_s9 = scalar_lea.vmem %s588_s7, 32 }
 0x110   :  { %336 = vadd.xlane.f32.xlu1 %v313_v57  ;;  %v311_v2 = vmul.f32 %v881_v24, %v288_v59  ;;  %v319_v13 = vmul.f32 %v881_v24, %v296_v7  ;;  %p805_p10 = scmp.ne.s32.totalorder %s588_s7, %s804_s8  ;;  %p809_p11 = scmp.lt.s32.totalorder %s588_s7, %s588_s7 }
 0x111   :  { %p810_p12 = scmp.lt.s32.totalorder %s808_s9, %s804_s8 }
 0x112   :  { %334 = vadd.xlane.f32.xlu0 %v312_v63 }
 0x113   :  { %p811_p13 = por %p810_p12, %p809_p11 }
 0x114   :  { %332 = vadd.xlane.f32.xlu1 %v311_v2 }
 0x115   :  { %p812_p0 = pnand %p811_p13, %p805_p10 }
 0x116   :  { %330 = vadd.xlane.f32.xlu0 %v310_v5 }
 0x118   :  { %344 = vadd.xlane.f32.xlu1 %v317_v8 }
 0x11a   :  { %342 = vadd.xlane.f32.xlu0 %v316_v11 }
 0x11c   :  { %348 = vadd.xlane.f32.xlu1 %v319_v13 }
 0x11e   :  { %346 = vadd.xlane.f32.xlu0 %v318_v15 }
 0x120   :  { %352 = vadd.xlane.f32.xlu1 %v321_v17 }
 0x122   :  { %350 = vadd.xlane.f32.xlu0 %v320_v18 }
 0x18d   :  { %v327_v19 = vpop.xlane.xlu1 %326 }
 0x18e   :  { %v358_v20 = vadd.f32 %v916_v16, %v327_v19 }
 0x18f   :  { %v323_v21 = vpop.xlane.xlu0 %322 }
 0x190   :  { %v356_v22 = vadd.f32 %v916_v16, %v323_v21  ;;  %v374_v26 = vsub.f32 0.0, %v358_v20 }
 0x191   :  { %v329_v23 = vpop.xlane.xlu1 %328 }
 0x192   :  { %v372_v25 = vsub.f32 0.0, %v356_v22  ;;  %v359_v27 = vadd.f32 %v916_v16, %v329_v23  ;;  %v392_v30 = vmul.f32 1.442695, %v374_v26 }
 0x193   :  { %v339_v28 = vpop.xlane.xlu0 %338 }
 0x194   :  { %v388_v29 = vmul.f32 1.442695, %v372_v25  ;;  %v375_v31 = vsub.f32 0.0, %v359_v27  ;;  %v364_v32 = vadd.f32 %v916_v16, %v339_v28  ;;  %v468_v25 = vlaneseq }
 0x195   :  { %v341_v24 = vpop.xlane.xlu1 %340 }
 0x196   :  { %700 = vpow2.f32 %v388_v29  ;;  %v365_v36 = vadd.f32 %v916_v16, %v341_v24  ;;  %v394_v39 = vmul.f32 1.442695, %v375_v31  ;;  %v380_v40 = vsub.f32 0.0, %v364_v32 }
 0x197   :  { %v325_v33 = vpop.xlane.xlu0 %324  ;;  %702 = vpow2.f32 %v392_v30 }
 0x198   :  { %v357_v34 = vadd.f32 %v916_v16, %v325_v33  ;;  %v381_v46 = vsub.f32 0.0, %v365_v36  ;;  %v404_v49 = vmul.f32 1.442695, %v380_v40 }
 0x199   :  { %v337_v35 = vpop.xlane.xlu1 %336 }
 0x19a   :  { %v373_v37 = vsub.f32 0.0, %v357_v34  ;;  %v363_v38 = vadd.f32 %v916_v16, %v337_v35  ;;  %v406_v56 = vmul.f32 1.442695, %v381_v46  ;;  %v934_v34 = vand.u32 127, %v468_v25 }
 0x19b   :  { %v335_v41 = vpop.xlane.xlu0 %334 }
 0x19c   :  { %v390_v42 = vmul.f32 1.442695, %v373_v37  ;;  %v379_v43 = vsub.f32 0.0, %v363_v38  ;;  %v362_v44 = vadd.f32 %v916_v16, %v335_v41  ;;  %v474_v37 = vadd.s32 4294967288, %v934_v34 }
 0x19d   :  { %v333_v45 = vpop.xlane.xlu1 %332 }
 0x19e   :  { %704 = vpow2.f32 %v390_v42  ;;  %v378_v47 = vsub.f32 0.0, %v362_v44  ;;  %v361_v48 = vadd.f32 %v916_v16, %v333_v45  ;;  %v402_v51 = vmul.f32 1.442695, %v379_v43 }
 0x19f   :  { %706 = vpow2.f32 %v394_v39  ;;  %v331_v50 = vpop.xlane.xlu0 %330  ;;  %v937_v42 = vshrl.u32 %v468_v25, 7 }
 0x1a0   :  { %v400_v52 = vmul.f32 1.442695, %v378_v47  ;;  %v377_v53 = vsub.f32 0.0, %v361_v48  ;;  %v360_v54 = vadd.f32 %v916_v16, %v331_v50  ;;  %v481_v48 = vadd.s32 4294967280, %v934_v34 }
 0x1a1   :  { %v345_v55 = vpop.xlane.xlu1 %344  ;;  %v477_v45 = vsub.s32 %v474_v37, %v937_v42 }
 0x1a2   :  { %708 = vpow2.f32 %v400_v52  ;;  %v398_v57 = vmul.f32 1.442695, %v377_v53  ;;  %v376_v58 = vsub.f32 0.0, %v360_v54  ;;  %v367_v59 = vadd.f32 %v916_v16, %v345_v55 }
 0x1a3   :  { %710 = vpow2.f32 %v404_v49  ;;  %v343_v60 = vpop.xlane.xlu0 %342  ;;  %v701_v63 = vpop.eup %700  ;;  %v488_v52 = vadd.s32 4294967272, %v934_v34 }
 0x1a4   :  { %712 = vpow2.f32 %v402_v51  ;;  %v396_v61 = vmul.f32 1.442695, %v376_v58  ;;  %v366_v62 = vadd.f32 %v916_v16, %v343_v60  ;;  %v383_v0 = vsub.f32 0.0, %v367_v59  ;;  %v703_v6 = vpop.eup %702 }
 0x1a5   :  { %714 = vpow2.f32 %v398_v57  ;;  %v349_v1 = vpop.xlane.xlu1 %348  ;;  %v420_v7 = vadd.f32 1.0, %v701_v63  ;;  %v422_v15 = vadd.f32 1.0, %v703_v6  ;;  %v472_v51 = vsub.s32 %v934_v34, %v937_v42 }
 0x1a6   :  { %716 = vpow2.f32 %v406_v56  ;;  %v382_v2 = vsub.f32 0.0, %v366_v62  ;;  %v369_v3 = vadd.f32 %v916_v16, %v349_v1  ;;  %v410_v4 = vmul.f32 1.442695, %v383_v0 }
 0x1a7   :  { %718 = vpow2.f32 %v396_v61  ;;  %v347_v5 = vpop.xlane.xlu0 %346  ;;  %v484_v58 = vsub.s32 %v481_v48, %v937_v42  ;;  %v495_v59 = vadd.s32 4294967264, %v934_v34  ;;  %v491_v63 = vsub.s32 %v488_v52, %v937_v42 }
 0x1a8   :  { %v408_v8 = vmul.f32 1.442695, %v382_v2  ;;  %v385_v9 = vsub.f32 0.0, %v369_v3  ;;  %720 = vpow2.f32 %v410_v4  ;;  %v368_v10 = vadd.f32 %v916_v16, %v347_v5 }
 0x1a9   :  { %v353_v11 = vpop.xlane.xlu1 %352  ;;  %v523_v0 = vadd.s32 4294967232, %v934_v34  ;;  %v502_v1 = vadd.s32 4294967256, %v934_v34  ;;  %v530_v2 = vadd.s32 4294967224, %v934_v34  ;;  %v509_v3 = vadd.s32 4294967248, %v934_v34 }
 0x1aa   :  { %v414_v12 = vmul.f32 1.442695, %v385_v9  ;;  %v371_v13 = vadd.f32 %v916_v16, %v353_v11  ;;  %722 = vpow2.f32 %v408_v8  ;;  %v384_v17 = vsub.f32 0.0, %v368_v10 }
 0x1ab   :  { %v705_v14 = vpop.eup %704  ;;  %v351_v18 = vpop.xlane.xlu0 %350  ;;  %724 = vrcp.f32 %v420_v7  ;;  %v516_v7 = vadd.s32 4294967240, %v934_v34  ;;  %v498_v10 = vsub.s32 %v495_v59, %v937_v42  ;;  %v572_v48 = vadd.s32 4294967176, %v934_v34 }
 0x1ac   :  { %v707_v19 = vpop.eup %706  ;;  %v421_v20 = vadd.f32 1.0, %v705_v14  ;;  %v387_v21 = vsub.f32 0.0, %v371_v13  ;;  %v370_v22 = vadd.f32 %v916_v16, %v351_v18  ;;  %726 = vpow2.f32 %v414_v12 }
 0x1ad   :  { %v412_v23 = vmul.f32 1.442695, %v384_v17  ;;  %v423_v24 = vadd.f32 1.0, %v707_v19  ;;  %v544_v12 = vadd.s32 4294967208, %v934_v34  ;;  %v526_v14 = vsub.s32 %v523_v0, %v937_v42 }
 0x1ae   :  { %728 = vrcp.f32 %v421_v20  ;;  %v418_v26 = vmul.f32 1.442695, %v387_v21  ;;  %v386_v27 = vsub.f32 0.0, %v370_v22  ;;  %v537_v17 = vadd.s32 4294967216, %v934_v34 }
 0x1af   :  { %v709_v28 = vpop.eup %708  ;;  %730 = vpow2.f32 %v412_v23  ;;  %v512_v20 = vsub.s32 %v509_v3, %v937_v42  ;;  %v533_v23 = vsub.s32 %v530_v2, %v937_v42  ;;  %v519_v25 = vsub.s32 %v516_v7, %v937_v42 }
 0x1b0   :  { %v711_v29 = vpop.eup %710  ;;  %732 = vrcp.f32 %v422_v15  ;;  %v416_v30 = vmul.f32 1.442695, %v386_v27  ;;  %v426_v32 = vadd.f32 1.0, %v709_v28  ;;  %v505_v15 = vsub.s32 %v502_v1, %v937_v42 }
 0x1b1   :  { %v713_v31 = vpop.eup %712  ;;  %734 = vpow2.f32 %v418_v26  ;;  %v428_v39 = vadd.f32 1.0, %v711_v29  ;;  %v547_v28 = vsub.s32 %v544_v12, %v937_v42  ;;  %v551_v29 = vadd.s32 4294967200, %v934_v34 }
 0x1b2   :  { %v715_v33 = vpop.eup %714  ;;  %736 = vpow2.f32 %v416_v30  ;;  %v427_v38 = vadd.f32 1.0, %v713_v31 }
 0x1b3   :  { %v717_v35 = vpop.eup %716  ;;  %v425_v16 = vadd.f32 1.0, %v715_v33  ;;  %738 = vrcp.f32 %v423_v24 }
 0x1b4   :  { %v719_v36 = vpop.eup %718  ;;  %740 = vrcp.f32 %v426_v32  ;;  %v429_v43 = vadd.f32 1.0, %v717_v35  ;;  %v540_v32 = vsub.s32 %v537_v17, %v937_v42 }
 0x1b5   :  { %v424_v40 = vadd.f32 1.0, %v719_v36  ;;  %v721_v41 = vpop.eup %720  ;;  %742 = vrcp.f32 %v425_v16  ;;  %v558_v36 = vadd.s32 4294967192, %v934_v34 }
 0x1b6   :  { %v431_v46 = vadd.f32 1.0, %v721_v41 }
 0x1b7   :  { %744 = vrcp.f32 %v424_v40  ;;  %v723_v44 = vpop.eup %722 }
 0x1b8   :  { %746 = vrcp.f32 %v427_v38  ;;  %v725_v47 = vpop.eup %724  ;;  %v430_v49 = vadd.f32 1.0, %v723_v44  ;;  %v554_v44 = vsub.s32 %v551_v29, %v937_v42 }
 0x1b9   :  { %748 = vrcp.f32 %v428_v39  ;;  %v727_v50 = vpop.eup %726  ;;  %v473_v62 = vrot.slane %v725_v47, %v472_v51 }
 0x1ba   :  { %750 = vrcp.f32 %v429_v43  ;;  %v433_v56 = vadd.f32 1.0, %v727_v50 }
 0x1bb   :  { %v729_v53 = vpop.eup %728  ;;  %752 = vrcp.f32 %v430_v49 }
 0x1bc   :  { %v731_v54 = vpop.eup %730  ;;  %v478_v55 = vrot.slane %v729_v53, %v477_v45  ;;  %754 = vrcp.f32 %v431_v46  ;;  %v565_v45 = vadd.s32 4294967184, %v934_v34 }
 0x1bd   :  { %v733_v57 = vpop.eup %732  ;;  %v432_v60 = vadd.f32 1.0, %v731_v54  ;;  %v561_v54 = vsub.s32 %v558_v36, %v937_v42 }
 0x1be   :  { %v735_v61 = vpop.eup %734  ;;  %v480_v6 = vsel %vm479_vm0, %v478_v55, %v473_v62  ;;  %v485_v9 = vrot.slane %v733_v57, %v484_v58  ;;  %v568_v58 = vsub.s32 %v565_v45, %v937_v42 }
 0x1bf   :  { %756 = vrcp.f32 %v432_v60  ;;  %v435_v4 = vadd.f32 1.0, %v735_v61  ;;  %v737_v5 = vpop.eup %736  ;;  %v575_v60 = vsub.s32 %v572_v48, %v937_v42 }
 0x1c0   :  { %758 = vrcp.f32 %v433_v56  ;;  %v739_v8 = vpop.eup %738  ;;  %v434_v11 = vadd.f32 1.0, %v737_v5  ;;  %v487_v19 = vsel %vm486_vm1, %v485_v9, %v480_v6 }
 0x1c1   :  { %v741_v13 = vpop.eup %740  ;;  %760 = vrcp.f32 %v435_v4  ;;  %v492_v22 = vrot.slane %v739_v8, %v491_v63 }
 0x1c2   :  { %v743_v18 = vpop.eup %742  ;;  %762 = vrcp.f32 %v434_v11  ;;  %v513_v35 = vrot.slane %v741_v13, %v512_v20 }
 0x1c3   :  { %v506_v30 = vrot.slane %v743_v18, %v505_v15  ;;  %v494_v31 = vsel %vm493_vm2, %v492_v22, %v487_v19 }
 0x1c4   :  { %v745_v21 = vpop.eup %744 }
 0x1c5   :  { %v747_v26 = vpop.eup %746  ;;  %v499_v27 = vrot.slane %v745_v21, %v498_v10 }
 0x1c6   :  { %v749_v24 = vpop.eup %748  ;;  %v520_v38 = vrot.slane %v747_v26, %v519_v25 }
 0x1c7   :  { %v751_v33 = vpop.eup %750  ;;  %v501_v16 = vsel %vm500_vm3, %v499_v27, %v494_v31  ;;  %v527_v41 = vrot.slane %v749_v24, %v526_v14 }
 0x1c8   :  { %v753_v37 = vpop.eup %752  ;;  %v508_v39 = vsel %vm507_vm4, %v506_v30, %v501_v16  ;;  %v534_v46 = vrot.slane %v751_v33, %v533_v23 }
 0x1c9   :  { %v755_v40 = vpop.eup %754  ;;  %v515_v43 = vsel %vm514_vm5, %v513_v35, %v508_v39  ;;  %v541_v50 = vrot.slane %v753_v37, %v540_v32 }
 0x1ca   :  { %v522_v47 = vsel %vm521_vm6, %v520_v38, %v515_v43  ;;  %v548_v53 = vrot.slane %v755_v40, %v547_v28 }
 0x1cb   :  { %v529_v49 = vsel %vm528_vm7, %v527_v41, %v522_v47 }
 0x1cc   :  { %v757_v51 = vpop.eup %756  ;;  %v536_v52 = vsel %vm535_vm8, %v534_v46, %v529_v49 }
 0x1cd   :  { %v759_v55 = vpop.eup %758  ;;  %v543_v56 = vsel %vm542_vm9, %v541_v50, %v536_v52  ;;  %v555_v57 = vrot.slane %v757_v51, %v554_v44 }
 0x1ce   :  { %v550_v59 = vsel %vm549_vm10, %v548_v53, %v543_v56  ;;  %v761_v61 = vpop.eup %760  ;;  %v562_v63 = vrot.slane %v759_v55, %v561_v54 }
 0x1cf   :  { %v557_v62 = vsel %vm556_vm11, %v555_v57, %v550_v59  ;;  %v763_v34 = vpop.eup %762  ;;  %v576_v2 = vrot.slane %v761_v61, %v575_v60 }
 0x1d0   :  { %v569_v0 = vrot.slane %v763_v34, %v568_v58  ;;  %v564_v1 = vsel %vm563_vm12, %v562_v63, %v557_v62 }
 0x1d2   :  { %v571_v3 = vsel %vm570_vm13, %v569_v0, %v564_v1 }
 0x1d3   :  { %v578_v4 = vsel %vm577_vm14, %v576_v2, %v571_v3 }
 0x1d4   :  { %580 = vst [vmem:[#allocation8] sm:$0x1] %v578_v4 }
 0x1d5   :  { %815 = shalt.err (!%p812_p0)
}
 0x1d6   :  { %590 = dma.vmem_to_hbm [thread:$0]  %s588_s7, 16, %s978_s5, [#allocation5]  }
 0x1d7   :  { %828 = dma.done.wait [#allocation5], 16  }
 0x1d8   :  { %829 = vsyncadd [#allocation5], 4294967280 }
 0x1d9   :  { %594 = vsyncpa [#allocation4], 1 }
 0x1da   :  { %595 = vsyncpa [#allocation7], 1 }
 0x1db   :  { %596 = vsyncpa [#allocation5], 1 }

</bundles_post_ra>
